<compile_context>
chip_gen: v7x
topology: tpu7x:2x2x1
jax: 0.10.0
libtpu: 0.0.40
codegen_flags: <defaults>
</compile_context>

<pallas_src>
import jax
import jax.numpy as jnp
from jax.experimental import pallas as pl
from jax.experimental.pallas import tpu as pltpu


def _round_up(x, m):
    return ((x + m - 1) // m) * m


def _pick_tile(total, candidates, cap=None):
    """Largest candidate that divides `total` (optionally capped); fallback total."""
    limit = total if cap is None else min(total, cap)
    for c in candidates:
        if c <= limit and total % c == 0:
            return c
    return total


# ----------------- Pallas kernel: HW = H @ [W_1 | W_2 | ... | W_R] -----------

def _hw_wide_kernel(h_ref, w_ref, out_ref):
    out_ref[...] = jnp.dot(
        h_ref[...], w_ref[...], preferred_element_type=jnp.float32
    ).astype(out_ref.dtype)


def _hw_wide_pallas(h_bf, w_wide_bf):
    """One wide GEMM over all relations.

    h_bf      : (N_pad, F_in_pad)           bf16
    w_wide_bf : (F_in_pad, R * F_out_pad)   bf16 (relation blocks along lanes)
    returns   : (N_pad, R * F_out_pad)      bf16
    """
    n_pad, f_in_pad = h_bf.shape
    wide = w_wide_bf.shape[1]

    # Cap the node tile so the parallel axis has >= 2 steps when possible
    # (keeps both v7x TensorCores busy; negligible overhead elsewhere).
    cap = n_pad // 2 if n_pad >= 256 else None
    tm = _pick_tile(n_pad, (1024, 512, 256, 128), cap=cap)
    tno = _pick_tile(wide, (512, 256, 128))
    grid = (n_pad // tm, wide // tno)

    return pl.pallas_call(
        _hw_wide_kernel,
        out_shape=jax.ShapeDtypeStruct((n_pad, wide), jnp.bfloat16),
        grid_spec=pltpu.PrefetchScalarGridSpec(
            num_scalar_prefetch=0,
            grid=grid,
            in_specs=[
                pl.BlockSpec((tm, f_in_pad), lambda i, j: (i, 0)),
                pl.BlockSpec((f_in_pad, tno), lambda i, j: (0, j)),
            ],
            out_specs=pl.BlockSpec((tm, tno), lambda i, j: (i, j)),
        ),
        compiler_params=pltpu.CompilerParams(
            dimension_semantics=("parallel", "parallel"),
            vmem_limit_bytes=32 * 1024 * 1024,
        ),
    )(h_bf, w_wide_bf)


# ------------- Pallas kernel: fused agg + self-loop + bias + ReLU ------------

def _make_rgcn_layer_kernel(nk):
    """grid = (dst tiles [parallel], K tiles [arbitrary reduction, last]).

    m_ref    : (TN, TK)              bf16  flattened adjacency tile
    hw_ref   : (TK, F_out_pad)       bf16  per-(src, relation) messages H @ W_r
    h_ref    : (TN, F_in_pad)        bf16  node features (self-loop term)
    wself_ref: (F_in_pad, F_out_pad) bf16  self-loop weight
    b_ref    : (1, F_out_pad)        f32   bias
    out_ref  : (TN, F_out_pad)       f32   output block == accumulator
                                           (index_map constant in k -> resident)

    The output block is written exactly once per K step: self+bias folded into
    the k==0 write, ReLU folded into the k==last write.
    """

    def kernel(m_ref, hw_ref, h_ref, wself_ref, b_ref, out_ref):
        contrib = jnp.dot(
            m_ref[...], hw_ref[...], preferred_element_type=jnp.float32
        )

        if nk == 1:
            base = (
                jnp.dot(h_ref[...], wself_ref[...],
                        preferred_element_type=jnp.float32)
                + b_ref[...]
            )
            out_ref[...] = jnp.maximum(base + contrib, 0.0)
        else:
            k = pl.program_id(1)

            @pl.when(k == 0)
            def _():
                base = (
                    jnp.dot(h_ref[...], wself_ref[...],
                            preferred_element_type=jnp.float32)
                    + b_ref[...]
                )
                out_ref[...] = base + contrib

            @pl.when(jnp.logical_and(k > 0, k < nk - 1))
            def _():
                out_ref[...] += contrib

            @pl.when(k == nk - 1)
            def _():
                out_ref[...] = jnp.maximum(out_ref[...] + contrib, 0.0)

    return kernel


def rgcn_layer(m_flat, h_pad, w_wide_pad, w_self_pad, bias_pad, f_out_pad):
    """One R-GCN layer on padded operands.

    m_flat    : (N_pad, K) bf16, K = N_pad * R with (src, r) ordering
                (or 128 zero columns if R == 0)
    h_pad     : (N_pad, F_in_pad) f32
    w_wide_pad: (F_in_pad, R * F_out_pad) bf16 (relation blocks along lanes)
    w_self_pad: (F_in_pad, F_out_pad) bf16
    bias_pad  : (1, F_out_pad) f32
    returns   : (N_pad, F_out_pad) f32
    """
    n_pad, k_dim = m_flat.shape
    f_in_pad = h_pad.shape[1]

    h_bf = h_pad.astype(jnp.bfloat16)

    if w_wide_pad.shape[1] > 0:
        hw_wide = _hw_wide_pallas(h_bf, w_wide_pad)          # (N_pad, R*F_out)
        hw_flat = hw_wide.reshape(-1, f_out_pad)             # free row-major
        assert hw_flat.shape[0] == k_dim, (hw_flat.shape, k_dim)
    else:
        # R == 0 guard: zero aggregation, single K step still writes the block
        # (self-loop + bias + ReLU).
        hw_flat = jnp.zeros((k_dim, f_out_pad), jnp.bfloat16)

    cap = n_pad // 2 if n_pad >= 256 else None
    tn = _pick_tile(n_pad, (1024, 512, 256, 128), cap=cap)
    tk = _pick_tile(k_dim, (4096, 2048, 1024, 512, 256, 128))
    grid = (n_pad // tn, k_dim // tk)

    return pl.pallas_call(
        _make_rgcn_layer_kernel(grid[1]),
        out_shape=jax.ShapeDtypeStruct((n_pad, f_out_pad), jnp.float32),
        grid_spec=pltpu.PrefetchScalarGridSpec(
            num_scalar_prefetch=0,
            grid=grid,
            in_specs=[
                pl.BlockSpec((tn, tk), lambda i, k: (i, k)),
                pl.BlockSpec((tk, f_out_pad), lambda i, k: (k, 0)),
                pl.BlockSpec((tn, f_in_pad), lambda i, k: (i, 0)),
                pl.BlockSpec((f_in_pad, f_out_pad), lambda i, k: (0, 0)),
                pl.BlockSpec((1, f_out_pad), lambda i, k: (0, 0)),
            ],
            out_specs=pl.BlockSpec((tn, f_out_pad), lambda i, k: (i, 0)),
        ),
        compiler_params=pltpu.CompilerParams(
            dimension_semantics=("parallel", "arbitrary"),
            # 32 MiB: above v5e's 16 MiB default, below v7x's 64 MiB physical.
            vmem_limit_bytes=32 * 1024 * 1024,
        ),
    )(m_flat, hw_flat, h_bf, w_self_pad, bias_pad)


# ------------------------------- RGCN model ----------------------------------

class RGCNParams:
    """Deterministic parameter container (synthetic init, no checkpoint load)."""

    def __init__(self, key, inp_dim, emb_dim, num_rels, num_bases, num_layers):
        self.inp_dim = inp_dim
        self.emb_dim = emb_dim
        self.num_rels = num_rels
        self.num_bases = num_bases
        self.num_layers = num_layers
        self.layers = []
        for li in range(num_layers):
            f_in = inp_dim if li == 0 else emb_dim
            f_out = emb_dim
            key, k1, k2, k3 = jax.random.split(key, 4)
            basis = jax.random.normal(k1, (num_bases, f_in, f_out), jnp.float32) * 0.1
            w_comp = jax.random.normal(k2, (num_rels, num_bases), jnp.float32) * 0.1
            w_self = jax.random.normal(k3, (f_in, f_out), jnp.float32) * 0.1
            bias = jnp.zeros((1, f_out), jnp.float32)
            # basis decomposition: W_r = sum_b w_comp[r, b] * basis[b]
            w_rel = jnp.einsum("rb,bio->rio", w_comp, basis)

            # Zero-padded, bf16 copies for the kernels (128-lane aligned so the
            # output stores are lane-dense and the MXU columns are full).
            # NOTE: emb_dim << 128 wastes lanes; acceptable at these sizes.
            f_in_pad = _round_up(f_in, 128)
            f_out_pad = _round_up(f_out, 128)
            w_pad = (
                jnp.zeros((num_rels, f_in_pad, f_out_pad), jnp.float32)
                .at[:, :f_in, :f_out].set(w_rel)
            )
            # Wide concat for the single all-relations GEMM; column block r is
            # W_r, matching the (src, r) K ordering of the flattened adjacency.
            # (Tiny one-time transpose on parameters, not on activations.)
            w_wide = (
                jnp.transpose(w_pad, (1, 0, 2))
                .reshape(f_in_pad, num_rels * f_out_pad)
                .astype(jnp.bfloat16)
            )
            w_self_pad = (
                jnp.zeros((f_in_pad, f_out_pad), jnp.float32)
                .at[:f_in, :f_out].set(w_self).astype(jnp.bfloat16)
            )
            bias_pad = jnp.zeros((1, f_out_pad), jnp.float32).at[:, :f_out].set(bias)

            self.layers.append(dict(
                W=w_rel, W_self=w_self, bias=bias,            # f32 (reference)
                W_wide_pad=w_wide, W_self_pad=w_self_pad, bias_pad=bias_pad,
                f_out_pad=f_out_pad,
            ))


def build_adjacency_flat(src, dst, rel, mask, num_nodes_pad, num_rels):
    """Flattened adjacency with (src, r) K ordering, built WITHOUT a transpose.

    M_flat[dst, src*R + r] += mask_e   for every edge e.
    Returned as bf16 (exact for binary masks / integer multiplicities <= 256;
    keep f32 here if edge masks ever become fractional).
    """
    M = jnp.zeros((num_nodes_pad, num_nodes_pad, num_rels), jnp.float32)
    M = M.at[dst, src, rel].add(mask)
    return M.reshape(num_nodes_pad, num_nodes_pad * num_rels).astype(jnp.bfloat16)


def _reference_adjacency(src, dst, rel, mask, num_nodes, num_rels):
    """(R, dst, src) dense adjacency, reference-only."""
    M = jnp.zeros((num_rels, num_nodes, num_nodes), jnp.float32)
    return M.at[rel, dst, src].add(mask)


def rgcn_forward(params, node_feat, src, dst, rel, edge_mask):
    """Mirrors RGCN.forward / RGCN.message: per-layer update + repr concat."""
    N, f_in = node_feat.shape
    R = params.num_rels

    # Pad nodes to a multiple of 128 so the flattened reduction axis K = N_pad*R
    # is lane-aligned.  Padded nodes / feature lanes carry zero adjacency and
    # zero weights; they receive bias+ReLU but are sliced off and never feed
    # back into real nodes (their adjacency columns are zero).
    n_pad = _round_up(max(N, 8), 128)
    f_in_pad = _round_up(f_in, 128)

    if R > 0:
        m_flat = build_adjacency_flat(src, dst, rel, edge_mask, n_pad, R)
    else:
        m_flat = jnp.zeros((n_pad, 128), jnp.bfloat16)

    h = jnp.zeros((n_pad, f_in_pad), jnp.float32).at[:N, :f_in].set(node_feat)

    reprs = []
    for lp in params.layers:
        h = rgcn_layer(m_flat, h, lp["W_wide_pad"], lp["W_self_pad"],
                       lp["bias_pad"], lp["f_out_pad"])
        reprs.append(h[:N, : params.emb_dim])
    # TODO(synk): attention branch (has_attn=True) and non-sum aggregators
    # (mlp/gru/pna/edge) are not implemented; this covers the default
    # sum-aggregator, no-attention configuration.
    return jnp.concatenate(reprs, axis=1)


# --------------------------------- main ---------------------------------------

if __name__ == "__main__":
    key = jax.random.PRNGKey(0)

    # Small synthetic graph consistent with the module's forward.
    num_nodes = 16
    num_edges = 40
    inp_dim = 8
    emb_dim = 16
    num_rels = 4       # aug_num_rels
    num_bases = 2
    num_gcn_layers = 2

    key, kf, ks, kd, kr, km, kp = jax.random.split(key, 7)
    node_feat = jax.random.normal(kf, (num_nodes, inp_dim), jnp.float32)
    src = jax.random.randint(ks, (num_edges,), 0, num_nodes)
    dst = jax.random.randint(kd, (num_edges,), 0, num_nodes)
    rel = jax.random.randint(kr, (num_edges,), 0, num_rels)
    # g.edata['mask']: binary edge mask (e.g. edge dropout mask), shape (E,)
    edge_mask = jax.random.bernoulli(km, 0.8, (num_edges,)).astype(jnp.float32)

    params = RGCNParams(kp, inp_dim, emb_dim, num_rels, num_bases, num_gcn_layers)

    out = rgcn_forward(params, node_feat, src, dst, rel, edge_mask)
    out = jax.block_until_ready(out)

    assert out.shape == (num_nodes, emb_dim * num_gcn_layers), out.shape
    assert bool(jnp.all(jnp.isfinite(out)))

    # --- reference 1: mirrors the kernel's bf16 operands / f32 accumulation ---
    M_ref = _reference_adjacency(src, dst, rel, edge_mask, num_nodes, num_rels)
    M_bf = M_ref.astype(jnp.bfloat16).astype(jnp.float32)
    h_ref = node_feat
    reprs_bf = []
    for lp in params.layers:
        h_bf = h_ref.astype(jnp.bfloat16).astype(jnp.float32)
        w_bf = lp["W"].astype(jnp.bfloat16).astype(jnp.float32)
        wself_bf = lp["W_self"].astype(jnp.bfloat16).astype(jnp.float32)
        hw = jnp.einsum("nf,rfo->rno", h_bf, w_bf)
        hw = hw.astype(jnp.bfloat16).astype(jnp.float32)
        agg = jnp.einsum("rvu,ruo->vo", M_bf, hw)
        h_ref = jnp.maximum(agg + h_bf @ wself_bf + lp["bias"], 0.0)
        reprs_bf.append(h_ref)
    ref_bf = jnp.concatenate(reprs_bf, axis=1)
    assert jnp.allclose(out, ref_bf, atol=2e-3, rtol=2e-3), float(
        jnp.max(jnp.abs(out - ref_bf))
    )

    # --- reference 2: pure f32 module semantics (loose tol for bf16 rounding) -
    h_ref = node_feat
    reprs_f32 = []
    for lp in params.layers:
        agg = jnp.einsum("rvu,uf,rfo->vo", M_ref, h_ref, lp["W"])
        h_ref = jnp.maximum(agg + h_ref @ lp["W_self"] + lp["bias"], 0.0)
        reprs_f32.append(h_ref)
    ref_f32 = jnp.concatenate(reprs_f32, axis=1)
    assert jnp.allclose(out, ref_f32, atol=5e-2, rtol=5e-2), float(
        jnp.max(jnp.abs(out - ref_f32))
    )

    print("KERNEL_OK")
</pallas_src>

<mosaic_0001>
module attributes {stable_mosaic.version = 11 : i64} {
  func.func @_hw_wide_kernel(%arg0: i32, %arg1: i32, %arg2: memref<128x128xbf16, #tpu.memory_space<vmem>>, %arg3: memref<128x512xbf16, #tpu.memory_space<vmem>>, %arg4: memref<128x512xbf16, #tpu.memory_space<vmem>>) attributes {dimension_semantics = [#tpu.dimension_semantics<parallel>, #tpu.dimension_semantics<parallel>], iteration_bounds = array<i64: 1, 1>, scalar_prefetch = 0 : i64, scratch_operands = 0 : i64, tpu.core_type = #tpu.core_type<tc>, window_params = [{transform_indices = @transform_0, window_bounds = array<i64: 128, 128>}, {transform_indices = @transform_1, window_bounds = array<i64: 128, 512>}, {transform_indices = @transform_2, window_bounds = array<i64: 128, 512>}]} {
    %c0 = arith.constant 0 : index
    %c0_0 = arith.constant 0 : index
    %0 = vector.load %arg2[%c0, %c0_0] : memref<128x128xbf16, #tpu.memory_space<vmem>>, vector<128x128xbf16>
    %c0_1 = arith.constant 0 : index
    %c0_2 = arith.constant 0 : index
    %1 = vector.load %arg3[%c0_1, %c0_2] : memref<128x512xbf16, #tpu.memory_space<vmem>>, vector<128x512xbf16>
    %cst = arith.constant dense<0.000000e+00> : vector<128x512xf32>
    %2 = tpu.matmul %0, %1, %cst {dimension_numbers = #tpu.dot_dimension_numbers<[1], [0], [0], [1], [0, 0, 1, 1], [], []>} : vector<128x128xbf16>, vector<128x512xbf16>, vector<128x512xf32> -> vector<128x512xf32>
    %3 = arith.truncf %2 : vector<128x512xf32> to vector<128x512xbf16>
    %c0_3 = arith.constant 0 : index
    %c0_4 = arith.constant 0 : index
    %4 = vector.load %arg4[%c0_3, %c0_4] : memref<128x512xbf16, #tpu.memory_space<vmem>>, vector<128x512xbf16>
    tpu.vector_store %arg4[%c0_3, %c0_4], %3 {strides = array<i32>} : memref<128x512xbf16, #tpu.memory_space<vmem>>, vector<128x512xbf16>,
    return
  }
  func.func @transform_0(%arg0: i32, %arg1: i32) -> (i32, i32) {
    %c0_i32 = arith.constant 0 : i32
    %c0_i32_0 = arith.constant 0 : i32
    return %arg0, %c0_i32 : i32, i32
  }
  func.func @transform_1(%arg0: i32, %arg1: i32) -> (i32, i32) {
    %c0_i32 = arith.constant 0 : i32
    %c0_i32_0 = arith.constant 0 : i32
    return %c0_i32, %arg1 : i32, i32
  }
  func.func @transform_2(%arg0: i32, %arg1: i32) -> (i32, i32) {
    %c0_i32 = arith.constant 0 : i32
    return %arg0, %arg1 : i32, i32
  }
}

</mosaic_0001>

<bundles_post_ra>
// kernel: tpu_custom_call.1
= control target key start
LH: loop header
LB: loop body
LE: loop exit
PB: predicated region body
PF: predicated region fallthrough
CT: control target
= control target key end

     0   :  { %7 = vsyncpa [#allocation3], 0  ;;  %s1086_s0 = inlined_call_operand.hbm [shape: bf16[128,128], index: 0, kind: input, shape index: {}]   ;;  %s1087_s1 = inlined_call_operand.hbm [shape: bf16[128,512], index: 1, kind: input, shape index: {}]   ;;  %s1088_s2 = inlined_call_operand.hbm [shape: bf16[128,512], index: 2, kind: output, shape index: {}]  }
   0x1   :  { %8 = vsyncpa [#allocation6], 0 }
   0x2   :  { %9 = vsyncpa [#allocation4], 0  ;;  %s1005_s9 = smov [#allocation2]   ;;  %s933_s13 = scalar_lea.hbm %s1086_s0, 1024 }
   0x3   :  { %s15_s10 = sshll.u32 %s1005_s9, 4  ;;  %p934_p0 = scmp.ne.s32.totalorder %s1086_s0, %s933_s13  ;;  %s16_s10 = int_to_ptr.vmem [resolvable:$true] %s15_s10 }
   0x4   :  { %p937_p1 = scmp.lt.u32.totalorder %s933_s13, %s1086_s0 }
   0x6   :  { %p939_p2 = pnand %p937_p1, %p934_p0 }
   0x8   :  { %942 = shalt.err (!%p939_p2)
}
   0x9   :  { %s943_s18 = scalar_lea.vmem %s16_s10, 1024  ;;  %p948_p4 = scmp.lt.s32.totalorder %s16_s10, %s16_s10 }
   0xa   :  { %p944_p3 = scmp.ne.s32.totalorder %s16_s10, %s943_s18  ;;  %p949_p5 = scmp.lt.s32.totalorder %s943_s18, %s943_s18 }
   0xc   :  { %p950_p6 = por %p949_p5, %p948_p4 }
   0xe   :  { %p951_p7 = pnand %p950_p6, %p944_p3 }
  0x10   :  { %954 = shalt.err (!%p951_p7)
}
  0x11   :  { %s1006_s19 = smov 64   ;;  %s1007_s20 = smov 4  }
  0x12   :  { %21 = dma.hbm_to_vmem [thread:$0]  %s1086_s0, 1024, %s16_s10, [#allocation3], %s1006_s19, %s1006_s19, %s1007_s20  }
  0x13   :  { %s1008_s23 = smov [#allocation5]   ;;  %s955_s27 = scalar_lea.hbm %s1087_s1, 4096 }
  0x14   :  { %s27_s24 = sshll.u32 %s1008_s23, 4  ;;  %p956_p8 = scmp.ne.s32.totalorder %s1087_s1, %s955_s27  ;;  %s28_s24 = int_to_ptr.vmem [resolvable:$true] %s27_s24 }
  0x15   :  { %p959_p9 = scmp.lt.u32.totalorder %s955_s27, %s1087_s1 }
  0x17   :  { %p961_p10 = pnand %p959_p9, %p956_p8 }
  0x19   :  { %964 = shalt.err (!%p961_p10)
}
  0x1a   :  { %s965_s4 = scalar_lea.vmem %s28_s24, 4096  ;;  %p970_p12 = scmp.lt.s32.totalorder %s28_s24, %s28_s24 }
  0x1b   :  { %p966_p11 = scmp.ne.s32.totalorder %s28_s24, %s965_s4  ;;  %p971_p13 = scmp.lt.s32.totalorder %s965_s4, %s965_s4 }
  0x1d   :  { %p972_p0 = por %p971_p13, %p970_p12 }
  0x1f   :  { %p973_p1 = pnand %p972_p0, %p966_p11 }
  0x21   :  { %976 = shalt.err (!%p973_p1)
}
  0x22   :  { %s1009_s0 = smov 256   ;;  %s1010_s5 = smov 16  }
  0x23   :  { %33 = dma.hbm_to_vmem [thread:$0]  %s1087_s1, 4096, %s28_s24, [#allocation6], %s1009_s0, %s1009_s0, %s1010_s5  }
  0x24   :  { %999 = dma.done.wait [#allocation3], 1024  }
  0x25   :  { %1000 = vsyncadd [#allocation3], 4294966272 }
  0x26   :  { %1001 = dma.done.wait [#allocation6], 4096  }
  0x27   :  { %1002 = vsyncadd [#allocation6], 4294963200  ;;  %v1011_v0 = vmov 0   ;;  %v877_v1 = vld [vmem:[#allocation5 + $0x4] ss:$16 sps:$4 sm:$0xff]   ;;  %v926_v34 = vld [vmem:[#allocation2 + $0x8] sm:$0xff]  }
  0x28   :  { %329 = vmatprep.mubr.bf16.mxu0 %v1011_v0  ;;  %442 = vmatprep.mubr.bf16.mxu1 %v1011_v0  ;;  %v879_v2 = vld [vmem:[#allocation5 + $0xc] ss:$16 sps:$4 sm:$0xff]   ;;  %v881_v3 = vld [vmem:[#allocation5] ss:$16 sps:$4 sm:$0xff]   ;;  %v882_v4 = vld [vmem:[#allocation5 + $0x8] ss:$16 sps:$4 sm:$0xff]  }
  0x29   :  { %297 = vmatprep.subr.bf16.mxu0 %v877_v1  ;;  %410 = vmatprep.subr.bf16.mxu1 %v879_v2  ;;  %v883_v5 = vld [vmem:[#allocation5 + $0x24] ss:$16 sps:$4 sm:$0xff]   ;;  %v885_v6 = vld [vmem:[#allocation5 + $0x2c] ss:$16 sps:$4 sm:$0xff]   ;;  %v887_v7 = vld [vmem:[#allocation5 + $0x20] ss:$16 sps:$4 sm:$0xff]  }
  0x2a   :  { %298 = vmatpush1.bf16.msra.mxu0 %v881_v3  ;;  %411 = vmatpush1.bf16.msra.mxu1 %v882_v4  ;;  %v888_v8 = vld [vmem:[#allocation5 + $0x28] ss:$16 sps:$4 sm:$0xff]   ;;  %v889_v9 = vld [vmem:[#allocation5 + $0x44] ss:$16 sps:$4 sm:$0xff]   ;;  %v891_v10 = vld [vmem:[#allocation5 + $0x4c] ss:$16 sps:$4 sm:$0xff]  }
  0x2b   :  { %299 = vmatprep.subr.bf16.mxu0 %v883_v5  ;;  %412 = vmatprep.subr.bf16.mxu1 %v885_v6  ;;  %v893_v11 = vld [vmem:[#allocation5 + $0x40] ss:$16 sps:$4 sm:$0xff]   ;;  %v894_v12 = vld [vmem:[#allocation5 + $0x48] ss:$16 sps:$4 sm:$0xff]   ;;  %v895_v13 = vld [vmem:[#allocation5 + $0x64] ss:$16 sps:$4 sm:$0xff]  }
  0x2c   :  { %v897_v14 = vld [vmem:[#allocation5 + $0x6c] ss:$16 sps:$4 sm:$0xff]   ;;  %v899_v15 = vld [vmem:[#allocation5 + $0x60] ss:$16 sps:$4 sm:$0xff]   ;;  %v900_v16 = vld [vmem:[#allocation5 + $0x68] ss:$16 sps:$4 sm:$0xff]  }
  0x2d   :  { %v901_v17 = vld [vmem:[#allocation5 + $0x84] ss:$16 sps:$4 sm:$0xff]   ;;  %v903_v18 = vld [vmem:[#allocation5 + $0x8c] ss:$16 sps:$4 sm:$0xff]   ;;  %v905_v19 = vld [vmem:[#allocation5 + $0x80] ss:$16 sps:$4 sm:$0xff]  }
  0x2e   :  { %300 = vmatpush1.bf16.msra.mxu0 %v887_v7  ;;  %413 = vmatpush1.bf16.msra.mxu1 %v888_v8  ;;  %v906_v20 = vld [vmem:[#allocation5 + $0x88] ss:$16 sps:$4 sm:$0xff]   ;;  %v907_v21 = vld [vmem:[#allocation5 + $0xa4] ss:$16 sps:$4 sm:$0xff]   ;;  %v909_v22 = vld [vmem:[#allocation5 + $0xac] ss:$16 sps:$4 sm:$0xff]  }
  0x2f   :  { %301 = vmatprep.subr.bf16.mxu0 %v889_v9  ;;  %414 = vmatprep.subr.bf16.mxu1 %v891_v10  ;;  %v911_v23 = vld [vmem:[#allocation5 + $0xa0] ss:$16 sps:$4 sm:$0xff]   ;;  %v912_v24 = vld [vmem:[#allocation5 + $0xa8] ss:$16 sps:$4 sm:$0xff]   ;;  %v913_v25 = vld [vmem:[#allocation5 + $0xc4] ss:$16 sps:$4 sm:$0xff]  }
  0x30   :  { %v915_v26 = vld [vmem:[#allocation5 + $0xcc] ss:$16 sps:$4 sm:$0xff]   ;;  %v917_v27 = vld [vmem:[#allocation5 + $0xc0] ss:$16 sps:$4 sm:$0xff]   ;;  %v918_v28 = vld [vmem:[#allocation5 + $0xc8] ss:$16 sps:$4 sm:$0xff]  }
  0x31   :  { %v919_v29 = vld [vmem:[#allocation5 + $0xe4] ss:$16 sps:$4 sm:$0xff]   ;;  %v921_v30 = vld [vmem:[#allocation5 + $0xec] ss:$16 sps:$4 sm:$0xff]   ;;  %v923_v31 = vld [vmem:[#allocation5 + $0xe0] ss:$16 sps:$4 sm:$0xff]  }
  0x32   :  { %302 = vmatpush1.bf16.msra.mxu0 %v893_v11  ;;  %415 = vmatpush1.bf16.msra.mxu1 %v894_v12  ;;  %v924_v32 = vld [vmem:[#allocation5 + $0xe8] ss:$16 sps:$4 sm:$0xff]   ;;  %v925_v33 = vld [vmem:[#allocation2] sm:$0xff]   ;;  %v927_v35 = vld [vmem:[#allocation2 + $0x10] sm:$0xff]   ;;  %s1012_s1 = smov [#allocation7]  }
  0x33   :  { %303 = vmatprep.subr.bf16.mxu0 %v895_v13  ;;  %416 = vmatprep.subr.bf16.mxu1 %v897_v14  ;;  %v928_v36 = vld [vmem:[#allocation2 + $0x18] sm:$0xff]   ;;  %v929_v37 = vld [vmem:[#allocation2 + $0x20] sm:$0xff]   ;;  %v930_v38 = vld [vmem:[#allocation2 + $0x28] sm:$0xff]   ;;  %s752_s8 = sshll.u32 %s1012_s1, 4  ;;  %s753_s8 = int_to_ptr.vmem [resolvable:$true] %s752_s8 }
  0x34   :  { %v931_v39 = vld [vmem:[#allocation2 + $0x30] sm:$0xff]   ;;  %v932_v40 = vld [vmem:[#allocation2 + $0x38] sm:$0xff]   ;;  %s977_s9 = scalar_lea.vmem %s753_s8, 4096  ;;  %p982_p3 = scmp.lt.s32.totalorder %s753_s8, %s753_s8 }
  0x35   :  { %p978_p2 = scmp.ne.s32.totalorder %s753_s8, %s977_s9  ;;  %p983_p4 = scmp.lt.s32.totalorder %s977_s9, %s977_s9 }
  0x36   :  { %304 = vmatpush1.bf16.msra.mxu0 %v899_v15  ;;  %417 = vmatpush1.bf16.msra.mxu1 %v900_v16 }
  0x37   :  { %305 = vmatprep.subr.bf16.mxu0 %v901_v17  ;;  %418 = vmatprep.subr.bf16.mxu1 %v903_v18  ;;  %p984_p5 = por %p983_p4, %p982_p3 }
  0x39   :  { %p985_p6 = pnand %p984_p5, %p978_p2 }
  0x3a   :  { %306 = vmatpush1.bf16.msra.mxu0 %v905_v19  ;;  %419 = vmatpush1.bf16.msra.mxu1 %v906_v20 }
  0x3b   :  { %307 = vmatprep.subr.bf16.mxu0 %v907_v21  ;;  %420 = vmatprep.subr.bf16.mxu1 %v909_v22 }
  0x3e   :  { %308 = vmatpush1.bf16.msra.mxu0 %v911_v23  ;;  %421 = vmatpush1.bf16.msra.mxu1 %v912_v24 }
  0x3f   :  { %309 = vmatprep.subr.bf16.mxu0 %v913_v25  ;;  %422 = vmatprep.subr.bf16.mxu1 %v915_v26 }
  0x42   :  { %310 = vmatpush1.bf16.msra.mxu0 %v917_v27  ;;  %423 = vmatpush1.bf16.msra.mxu1 %v918_v28 }
  0x43   :  { %311 = vmatprep.subr.bf16.mxu0 %v919_v29  ;;  %424 = vmatprep.subr.bf16.mxu1 %v921_v30 }
  0x46   :  { %312 = vmatpush1.bf16.msra.mxu0 %v923_v31  ;;  %425 = vmatpush1.bf16.msra.mxu1 %v924_v32 }
  0x49   :  { %330 = vmatmul.mubr.bf16.vlgmr.msra.gmra.mrb[0].mxu0 %v925_v33  ;;  %443 = vmatmul.mubr.bf16.vlgmr.msra.gmra.mrb[0].mxu1 %v925_v33 }
  0x4a   :  { %339 = vmatprep.mubr.bf16.mxu0 %v1011_v0  ;;  %452 = vmatprep.mubr.bf16.mxu1 %v1011_v0 }
  0x51   :  { %340 = vmatmul.mubr.bf16.gmra.mrb[4].mxu0 %v926_v34  ;;  %453 = vmatmul.mubr.bf16.gmra.mrb[4].mxu1 %v926_v34 }
  0x52   :  { %349 = vmatprep.mubr.bf16.mxu0 %v1011_v0  ;;  %462 = vmatprep.mubr.bf16.mxu1 %v1011_v0 }
  0x59   :  { %350 = vmatmul.mubr.bf16.gmra.mrb[8].mxu0 %v927_v35  ;;  %463 = vmatmul.mubr.bf16.gmra.mrb[8].mxu1 %v927_v35 }
  0x5a   :  { %359 = vmatprep.mubr.bf16.mxu0 %v1011_v0  ;;  %472 = vmatprep.mubr.bf16.mxu1 %v1011_v0 }
  0x61   :  { %360 = vmatmul.mubr.bf16.gmra.mrb[12].mxu0 %v928_v36  ;;  %473 = vmatmul.mubr.bf16.gmra.mrb[12].mxu1 %v928_v36 }
  0x62   :  { %369 = vmatprep.mubr.bf16.mxu0 %v1011_v0  ;;  %482 = vmatprep.mubr.bf16.mxu1 %v1011_v0 }
  0x69   :  { %370 = vmatmul.mubr.bf16.gmra.mrb[16].mxu0 %v929_v37  ;;  %483 = vmatmul.mubr.bf16.gmra.mrb[16].mxu1 %v929_v37 }
  0x6a   :  { %379 = vmatprep.mubr.bf16.mxu0 %v1011_v0  ;;  %492 = vmatprep.mubr.bf16.mxu1 %v1011_v0 }
  0x71   :  { %380 = vmatmul.mubr.bf16.gmra.mrb[20].mxu0 %v930_v38  ;;  %493 = vmatmul.mubr.bf16.gmra.mrb[20].mxu1 %v930_v38 }
  0x72   :  { %389 = vmatprep.mubr.bf16.mxu0 %v1011_v0  ;;  %502 = vmatprep.mubr.bf16.mxu1 %v1011_v0 }
  0x79   :  { %390 = vmatmul.mubr.bf16.gmra.mrb[24].mxu0 %v931_v39  ;;  %503 = vmatmul.mubr.bf16.gmra.mrb[24].mxu1 %v931_v39 }
  0x7a   :  { %399 = vmatprep.mubr.bf16.mxu0 %v1011_v0  ;;  %512 = vmatprep.mubr.bf16.mxu1 %v1011_v0 }
  0x81   :  { %400 = vmatmul.mubr.bf16.gmra.mrb[28].mxu0 %v932_v40  ;;  %513 = vmatmul.mubr.bf16.gmra.mrb[28].mxu1 %v932_v40 }
 0x11c   :  { %v331_v41 = vpop.f32.mrb[0].mxu0  ;;  %v444_v42 = vpop.f32.mrb[0].mxu1 }
 0x11d   :  { %v333_v43 = vpop.f32.mrb[1].mxu0  ;;  %v446_v44 = vpop.f32.mrb[1].mxu1 }
 0x11e   :  { %v837_v45 = vpack.c.bf16 %v333_v43, %v331_v41  ;;  %v838_v46 = vpack.c.bf16 %v446_v44, %v444_v42  ;;  %v335_v47 = vpop.f32.mrb[2].mxu0  ;;  %v448_v48 = vpop.f32.mrb[2].mxu1 }
 0x11f   :  { %v337_v49 = vpop.f32.mrb[3].mxu0  ;;  %v450_v50 = vpop.f32.mrb[3].mxu1 }
 0x120   :  { %715 = vst [vmem:[#allocation7] sm:$0xff] %v837_v45  ;;  %716 = vst [vmem:[#allocation7 + $0x8] sm:$0xff] %v838_v46  ;;  %v839_v51 = vpack.c.bf16 %v337_v49, %v335_v47  ;;  %v840_v52 = vpack.c.bf16 %v450_v50, %v448_v48 }
 0x122   :  { %717 = vst [vmem:[#allocation7 + $0x10] sm:$0xff] %v839_v51  ;;  %718 = vst [vmem:[#allocation7 + $0x18] sm:$0xff] %v840_v52 }
 0x124   :  { %v341_v53 = vpop.f32.mrb[4].mxu0  ;;  %v454_v54 = vpop.f32.mrb[4].mxu1 }
 0x125   :  { %v343_v55 = vpop.f32.mrb[5].mxu0  ;;  %v456_v56 = vpop.f32.mrb[5].mxu1 }
 0x126   :  { %v841_v57 = vpack.c.bf16 %v343_v55, %v341_v53  ;;  %v842_v58 = vpack.c.bf16 %v456_v56, %v454_v54  ;;  %v345_v59 = vpop.f32.mrb[6].mxu0  ;;  %v458_v60 = vpop.f32.mrb[6].mxu1 }
 0x127   :  { %v347_v61 = vpop.f32.mrb[7].mxu0  ;;  %v460_v62 = vpop.f32.mrb[7].mxu1 }
 0x128   :  { %719 = vst [vmem:[#allocation7 + $0x20] sm:$0xff] %v841_v57  ;;  %720 = vst [vmem:[#allocation7 + $0x28] sm:$0xff] %v842_v58  ;;  %v843_v63 = vpack.c.bf16 %v347_v61, %v345_v59  ;;  %v844_v0 = vpack.c.bf16 %v460_v62, %v458_v60 }
 0x12a   :  { %721 = vst [vmem:[#allocation7 + $0x30] sm:$0xff] %v843_v63  ;;  %722 = vst [vmem:[#allocation7 + $0x38] sm:$0xff] %v844_v0 }
 0x12c   :  { %v351_v1 = vpop.f32.mrb[8].mxu0  ;;  %v464_v2 = vpop.f32.mrb[8].mxu1 }
 0x12d   :  { %v353_v3 = vpop.f32.mrb[9].mxu0  ;;  %v466_v4 = vpop.f32.mrb[9].mxu1 }
 0x12e   :  { %v845_v5 = vpack.c.bf16 %v353_v3, %v351_v1  ;;  %v846_v6 = vpack.c.bf16 %v466_v4, %v464_v2  ;;  %v355_v7 = vpop.f32.mrb[10].mxu0  ;;  %v468_v8 = vpop.f32.mrb[10].mxu1 }
 0x12f   :  { %v357_v9 = vpop.f32.mrb[11].mxu0  ;;  %v470_v10 = vpop.f32.mrb[11].mxu1 }
 0x130   :  { %723 = vst [vmem:[#allocation7 + $0x40] sm:$0xff] %v845_v5  ;;  %724 = vst [vmem:[#allocation7 + $0x48] sm:$0xff] %v846_v6  ;;  %v847_v11 = vpack.c.bf16 %v357_v9, %v355_v7  ;;  %v848_v12 = vpack.c.bf16 %v470_v10, %v468_v8 }
 0x132   :  { %725 = vst [vmem:[#allocation7 + $0x50] sm:$0xff] %v847_v11  ;;  %726 = vst [vmem:[#allocation7 + $0x58] sm:$0xff] %v848_v12 }
 0x134   :  { %v361_v13 = vpop.f32.mrb[12].mxu0  ;;  %v474_v14 = vpop.f32.mrb[12].mxu1 }
 0x135   :  { %v363_v15 = vpop.f32.mrb[13].mxu0  ;;  %v476_v16 = vpop.f32.mrb[13].mxu1 }
 0x136   :  { %v849_v17 = vpack.c.bf16 %v363_v15, %v361_v13  ;;  %v850_v18 = vpack.c.bf16 %v476_v16, %v474_v14  ;;  %v365_v19 = vpop.f32.mrb[14].mxu0  ;;  %v478_v20 = vpop.f32.mrb[14].mxu1 }
 0x137   :  { %v367_v21 = vpop.f32.mrb[15].mxu0  ;;  %v480_v22 = vpop.f32.mrb[15].mxu1 }
 0x138   :  { %727 = vst [vmem:[#allocation7 + $0x60] sm:$0xff] %v849_v17  ;;  %728 = vst [vmem:[#allocation7 + $0x68] sm:$0xff] %v850_v18  ;;  %v851_v23 = vpack.c.bf16 %v367_v21, %v365_v19  ;;  %v852_v24 = vpack.c.bf16 %v480_v22, %v478_v20 }
 0x13a   :  { %729 = vst [vmem:[#allocation7 + $0x70] sm:$0xff] %v851_v23  ;;  %730 = vst [vmem:[#allocation7 + $0x78] sm:$0xff] %v852_v24 }
 0x13c   :  { %v371_v25 = vpop.f32.mrb[16].mxu0  ;;  %v484_v26 = vpop.f32.mrb[16].mxu1 }
 0x13d   :  { %v373_v27 = vpop.f32.mrb[17].mxu0  ;;  %v486_v28 = vpop.f32.mrb[17].mxu1 }
 0x13e   :  { %v853_v29 = vpack.c.bf16 %v373_v27, %v371_v25  ;;  %v854_v30 = vpack.c.bf16 %v486_v28, %v484_v26  ;;  %v375_v31 = vpop.f32.mrb[18].mxu0  ;;  %v488_v32 = vpop.f32.mrb[18].mxu1 }
 0x13f   :  { %v377_v33 = vpop.f32.mrb[19].mxu0  ;;  %v490_v34 = vpop.f32.mrb[19].mxu1 }
 0x140   :  { %731 = vst [vmem:[#allocation7 + $0x80] sm:$0xff] %v853_v29  ;;  %732 = vst [vmem:[#allocation7 + $0x88] sm:$0xff] %v854_v30  ;;  %v855_v35 = vpack.c.bf16 %v377_v33, %v375_v31  ;;  %v856_v36 = vpack.c.bf16 %v490_v34, %v488_v32 }
 0x142   :  { %733 = vst [vmem:[#allocation7 + $0x90] sm:$0xff] %v855_v35  ;;  %734 = vst [vmem:[#allocation7 + $0x98] sm:$0xff] %v856_v36 }
 0x144   :  { %v381_v37 = vpop.f32.mrb[20].mxu0  ;;  %v494_v38 = vpop.f32.mrb[20].mxu1 }
 0x145   :  { %v383_v39 = vpop.f32.mrb[21].mxu0  ;;  %v496_v40 = vpop.f32.mrb[21].mxu1 }
 0x146   :  { %v857_v41 = vpack.c.bf16 %v383_v39, %v381_v37  ;;  %v858_v42 = vpack.c.bf16 %v496_v40, %v494_v38  ;;  %v385_v43 = vpop.f32.mrb[22].mxu0  ;;  %v498_v44 = vpop.f32.mrb[22].mxu1 }
 0x147   :  { %v387_v45 = vpop.f32.mrb[23].mxu0  ;;  %v500_v46 = vpop.f32.mrb[23].mxu1 }
 0x148   :  { %735 = vst [vmem:[#allocation7 + $0xa0] sm:$0xff] %v857_v41  ;;  %736 = vst [vmem:[#allocation7 + $0xa8] sm:$0xff] %v858_v42  ;;  %v859_v47 = vpack.c.bf16 %v387_v45, %v385_v43  ;;  %v860_v48 = vpack.c.bf16 %v500_v46, %v498_v44 }
 0x14a   :  { %737 = vst [vmem:[#allocation7 + $0xb0] sm:$0xff] %v859_v47  ;;  %738 = vst [vmem:[#allocation7 + $0xb8] sm:$0xff] %v860_v48 }
 0x14c   :  { %v391_v49 = vpop.f32.mrb[24].mxu0  ;;  %v504_v50 = vpop.f32.mrb[24].mxu1 }
 0x14d   :  { %v393_v51 = vpop.f32.mrb[25].mxu0  ;;  %v506_v52 = vpop.f32.mrb[25].mxu1 }
 0x14e   :  { %v861_v53 = vpack.c.bf16 %v393_v51, %v391_v49  ;;  %v862_v54 = vpack.c.bf16 %v506_v52, %v504_v50  ;;  %v395_v55 = vpop.f32.mrb[26].mxu0  ;;  %v508_v56 = vpop.f32.mrb[26].mxu1 }
 0x14f   :  { %v397_v57 = vpop.f32.mrb[27].mxu0  ;;  %v510_v58 = vpop.f32.mrb[27].mxu1 }
 0x150   :  { %739 = vst [vmem:[#allocation7 + $0xc0] sm:$0xff] %v861_v53  ;;  %740 = vst [vmem:[#allocation7 + $0xc8] sm:$0xff] %v862_v54  ;;  %v863_v59 = vpack.c.bf16 %v397_v57, %v395_v55  ;;  %v864_v60 = vpack.c.bf16 %v510_v58, %v508_v56 }
 0x152   :  { %741 = vst [vmem:[#allocation7 + $0xd0] sm:$0xff] %v863_v59  ;;  %742 = vst [vmem:[#allocation7 + $0xd8] sm:$0xff] %v864_v60 }
 0x154   :  { %v401_v61 = vpop.f32.mrb[28].mxu0  ;;  %v514_v62 = vpop.f32.mrb[28].mxu1 }
 0x155   :  { %v403_v63 = vpop.f32.mrb[29].mxu0  ;;  %v516_v0 = vpop.f32.mrb[29].mxu1 }
 0x156   :  { %v865_v1 = vpack.c.bf16 %v403_v63, %v401_v61  ;;  %v866_v2 = vpack.c.bf16 %v516_v0, %v514_v62  ;;  %v405_v3 = vpop.f32.mrb[30].mxu0  ;;  %v518_v4 = vpop.f32.mrb[30].mxu1 }
 0x157   :  { %v407_v5 = vpop.f32.mrb[31].mxu0  ;;  %v520_v6 = vpop.f32.mrb[31].mxu1 }
 0x158   :  { %743 = vst [vmem:[#allocation7 + $0xe0] sm:$0xff] %v865_v1  ;;  %744 = vst [vmem:[#allocation7 + $0xe8] sm:$0xff] %v866_v2  ;;  %v867_v7 = vpack.c.bf16 %v407_v5, %v405_v3  ;;  %v868_v8 = vpack.c.bf16 %v520_v6, %v518_v4 }
 0x15a   :  { %745 = vst [vmem:[#allocation7 + $0xf0] sm:$0xff] %v867_v7  ;;  %746 = vst [vmem:[#allocation7 + $0xf8] sm:$0xff] %v868_v8 }
 0x15b   :  { %988 = shalt.err (!%p985_p6)
}
 0x15c   :  { %s989_s12 = scalar_lea.hbm %s1088_s2, 4096 }
 0x15d   :  { %p990_p7 = scmp.ne.s32.totalorder %s1088_s2, %s989_s12  ;;  %p993_p8 = scmp.lt.u32.totalorder %s989_s12, %s1088_s2 }
 0x15f   :  { %p995_p9 = pnand %p993_p8, %p990_p7 }
 0x161   :  { %998 = shalt.err (!%p995_p9)
}
 0x162   :  { %758 = dma.vmem_to_hbm [thread:$0]  %s753_s8, 4096, %s1088_s2, [#allocation4], %s1009_s0, %s1009_s0, %s1010_s5  }
 0x163   :  { %1003 = dma.done.wait [#allocation4], 4096  }
 0x164   :  { %1004 = vsyncadd [#allocation4], 4294963200 }
 0x165   :  { %762 = vsyncpa [#allocation3], 1 }
 0x166   :  { %763 = vsyncpa [#allocation6], 1 }
 0x167   :  { %764 = vsyncpa [#allocation4], 1 }

</bundles_post_ra>
